<compile_context>
chip_gen: v7x
topology: tpu7x:2x2x1
jax: 0.10.0
libtpu: 0.0.40
codegen_flags: <defaults>
</compile_context>

<pallas_src>
import jax
import jax.numpy as jnp
from jax.experimental import pallas as pl
from jax.experimental.pallas import tpu as pltpu


def xor_mlp_kernel(params_ref, x_ref, o_ref):
    """params_ref: SMEM f32[22]; x_ref: VMEM (2, TB); o_ref: VMEM (2, TB).

    Param packing (PyTorch layout, row-major flattened):
      [0:8]   w1[j, i]  at 2*j + i        (hidden.weight, (4, 2))
      [8:12]  b1[j]                        (hidden.bias)
      [12:20] w2[k, j]  at 12 + 4*k + j    (output.weight, (2, 4))
      [20:22] b2[k]                        (output.bias)
    """
    p = params_ref
    x = x_ref[...]                      # (2, TB) f32, batch on the lane axis
    x0 = x[0:1, :]                      # (1, TB)
    x1 = x[1:2, :]

    # Hidden layer: 4 units, K=2 contraction as VPU FMAs + ReLU.
    h = []
    for j in range(4):
        hj = x0 * p[2 * j + 0] + x1 * p[2 * j + 1] + p[8 + j]
        h.append(jnp.maximum(hj, 0.0))

    # Output layer: 2 units, K=4 contraction as VPU FMAs + sigmoid on the EUP.
    for k in range(2):
        base = 12 + 4 * k
        z = (h[0] * p[base + 0] + h[1] * p[base + 1]
             + h[2] * p[base + 2] + h[3] * p[base + 3] + p[20 + k])
        # sigmoid(z) = 0.5 * (1 + tanh(0.5 * z)); stable, lowers to EUP tanh.
        o_ref[k:k + 1, :] = (0.5 * (jnp.tanh(0.5 * z) + 1.0)).astype(o_ref.dtype)


def xor_mlp_forward(x, w1, b1, w2, b2, *, block_b=2048):
    """x: (B, 2); w1: (4, 2); b1: (4,); w2: (2, 4); b2: (2,)  (PyTorch layout).

    Returns sigmoid(relu(x @ w1.T + b1) @ w2.T + b2), shape (B, 2), float32.
    """
    x = jnp.asarray(x, jnp.float32)
    B = x.shape[0]

    params = jnp.concatenate([
        jnp.asarray(w1, jnp.float32).reshape(-1),
        jnp.asarray(b1, jnp.float32).reshape(-1),
        jnp.asarray(w2, jnp.float32).reshape(-1),
        jnp.asarray(b2, jnp.float32).reshape(-1),
    ])                                               # f32[22]

    # Lane-dense batch tiling: tile width must be a multiple of 128 lanes.
    assert block_b % 128 == 0
    tb = min(block_b, ((B + 127) // 128) * 128)
    b_pad = ((B + tb - 1) // tb) * tb

    x_t = x.T                                        # (2, B), feature-major
    if b_pad != B:
        x_t = jnp.pad(x_t, ((0, 0), (0, b_pad - B)))

    out_t = pl.pallas_call(
        xor_mlp_kernel,
        out_shape=jax.ShapeDtypeStruct((2, b_pad), jnp.float32),
        grid=(b_pad // tb,),
        in_specs=[
            # Packed parameters live in SMEM (no VMEM tiles / DMA streams).
            pl.BlockSpec(memory_space=pltpu.MemorySpace.SMEM),
            # Batch-tiled, lane-dense input block.
            pl.BlockSpec((2, tb), lambda i: (0, i),
                         memory_space=pltpu.MemorySpace.VMEM),
        ],
        out_specs=pl.BlockSpec((2, tb), lambda i: (0, i),
                               memory_space=pltpu.MemorySpace.VMEM),
        compiler_params=pltpu.CompilerParams(
            dimension_semantics=("parallel",),       # shard batch tiles on v7x's 2 TCs
        ),
    )(params, x_t)

    return out_t[:, :B].T                            # back to (B, 2)


def init_params(key):
    """Deterministic init matching PyTorch nn.Linear default (uniform +/- 1/sqrt(fan_in))."""
    k1, k2, k3, k4 = jax.random.split(key, 4)
    bound1 = 1.0 / jnp.sqrt(2.0)   # hidden: fan_in = 2
    bound2 = 1.0 / jnp.sqrt(4.0)   # output: fan_in = 4
    w1 = jax.random.uniform(k1, (4, 2), jnp.float32, -bound1, bound1)
    b1 = jax.random.uniform(k2, (4,), jnp.float32, -bound1, bound1)
    w2 = jax.random.uniform(k3, (2, 4), jnp.float32, -bound2, bound2)
    b2 = jax.random.uniform(k4, (2,), jnp.float32, -bound2, bound2)
    return w1, b1, w2, b2


def reference_forward(x, w1, b1, w2, b2):
    h = jnp.maximum(x @ w1.T + b1, 0.0)
    return jax.nn.sigmoid(h @ w2.T + b2)


if __name__ == "__main__":
    key = jax.random.PRNGKey(0)
    w1, b1, w2, b2 = init_params(key)

    # 1) XOR truth table (the module's canonical use case), B=4.
    #    Note: at B=4 the pallas_call launch overhead dominates; the kernel is
    #    structured for large batches where DMA/compute pipelining matters.
    x_small = jnp.array([[0.0, 0.0],
                         [0.0, 1.0],
                         [1.0, 0.0],
                         [1.0, 1.0]], dtype=jnp.float32)
    out_small = jax.block_until_ready(xor_mlp_forward(x_small, w1, b1, w2, b2))
    ref_small = reference_forward(x_small, w1, b1, w2, b2)
    assert out_small.shape == (4, 2)
    assert jnp.allclose(out_small, ref_small, atol=1e-5, rtol=1e-5)

    # 2) Larger ragged batch exercising the multi-tile pipelined path
    #    (1000 rows -> padded to 1024, 4 grid steps of 256 lanes).
    x_big = jax.random.normal(jax.random.PRNGKey(1), (1000, 2), jnp.float32)
    out_big = jax.block_until_ready(
        xor_mlp_forward(x_big, w1, b1, w2, b2, block_b=256))
    ref_big = reference_forward(x_big, w1, b1, w2, b2)
    assert out_big.shape == (1000, 2)
    assert jnp.allclose(out_big, ref_big, atol=1e-5, rtol=1e-5)

    print("KERNEL_OK")
</pallas_src>

<mosaic_0001>
module attributes {stable_mosaic.version = 11 : i64} {
  func.func @xor_mlp_kernel(%arg0: i32, %arg1: memref<22xf32, #tpu.memory_space<smem>>, %arg2: memref<2x128xf32, #tpu.memory_space<vmem>>, %arg3: memref<2x128xf32, #tpu.memory_space<vmem>>) attributes {dimension_semantics = [#tpu.dimension_semantics<parallel>], iteration_bounds = array<i64: 1>, scalar_prefetch = 0 : i64, scratch_operands = 0 : i64, tpu.core_type = #tpu.core_type<tc>, window_params = [{transform_indices = @transform_0, window_bounds = array<i64: 22>}, {transform_indices = @transform_1, window_bounds = array<i64: 2, 128>}, {transform_indices = @transform_2, window_bounds = array<i64: 2, 128>}]} {
    %c0 = arith.constant 0 : index
    %c0_0 = arith.constant 0 : index
    %0 = vector.load %arg2[%c0, %c0_0] : memref<2x128xf32, #tpu.memory_space<vmem>>, vector<2x128xf32>
    %1 = vector.extract_strided_slice %0 {offsets = [0, 0], sizes = [1, 128], strides = [1, 1]} : vector<2x128xf32> to vector<1x128xf32>
    %2 = vector.extract_strided_slice %0 {offsets = [1, 0], sizes = [1, 128], strides = [1, 1]} : vector<2x128xf32> to vector<1x128xf32>
    %c0_1 = arith.constant 0 : index
    %3 = memref.load %arg1[%c0_1] : memref<22xf32, #tpu.memory_space<smem>>
    %4 = vector.broadcast %3 : f32 to vector<1x128xf32>
    %5 = arith.mulf %1, %4 : vector<1x128xf32>
    %c1 = arith.constant 1 : index
    %6 = memref.load %arg1[%c1] : memref<22xf32, #tpu.memory_space<smem>>
    %7 = vector.broadcast %6 : f32 to vector<1x128xf32>
    %8 = arith.mulf %2, %7 : vector<1x128xf32>
    %9 = arith.addf %5, %8 : vector<1x128xf32>
    %c8 = arith.constant 8 : index
    %10 = memref.load %arg1[%c8] : memref<22xf32, #tpu.memory_space<smem>>
    %11 = vector.broadcast %10 : f32 to vector<1x128xf32>
    %12 = arith.addf %9, %11 : vector<1x128xf32>
    %cst = arith.constant 0.000000e+00 : f32
    %13 = vector.broadcast %cst : f32 to vector<1x128xf32>
    %14 = arith.maximumf %12, %13 : vector<1x128xf32>
    %c2 = arith.constant 2 : index
    %15 = memref.load %arg1[%c2] : memref<22xf32, #tpu.memory_space<smem>>
    %16 = vector.broadcast %15 : f32 to vector<1x128xf32>
    %17 = arith.mulf %1, %16 : vector<1x128xf32>
    %c3 = arith.constant 3 : index
    %18 = memref.load %arg1[%c3] : memref<22xf32, #tpu.memory_space<smem>>
    %19 = vector.broadcast %18 : f32 to vector<1x128xf32>
    %20 = arith.mulf %2, %19 : vector<1x128xf32>
    %21 = arith.addf %17, %20 : vector<1x128xf32>
    %c9 = arith.constant 9 : index
    %22 = memref.load %arg1[%c9] : memref<22xf32, #tpu.memory_space<smem>>
    %23 = vector.broadcast %22 : f32 to vector<1x128xf32>
    %24 = arith.addf %21, %23 : vector<1x128xf32>
    %cst_2 = arith.constant 0.000000e+00 : f32
    %25 = vector.broadcast %cst_2 : f32 to vector<1x128xf32>
    %26 = arith.maximumf %24, %25 : vector<1x128xf32>
    %c4 = arith.constant 4 : index
    %27 = memref.load %arg1[%c4] : memref<22xf32, #tpu.memory_space<smem>>
    %28 = vector.broadcast %27 : f32 to vector<1x128xf32>
    %29 = arith.mulf %1, %28 : vector<1x128xf32>
    %c5 = arith.constant 5 : index
    %30 = memref.load %arg1[%c5] : memref<22xf32, #tpu.memory_space<smem>>
    %31 = vector.broadcast %30 : f32 to vector<1x128xf32>
    %32 = arith.mulf %2, %31 : vector<1x128xf32>
    %33 = arith.addf %29, %32 : vector<1x128xf32>
    %c10 = arith.constant 10 : index
    %34 = memref.load %arg1[%c10] : memref<22xf32, #tpu.memory_space<smem>>
    %35 = vector.broadcast %34 : f32 to vector<1x128xf32>
    %36 = arith.addf %33, %35 : vector<1x128xf32>
    %cst_3 = arith.constant 0.000000e+00 : f32
    %37 = vector.broadcast %cst_3 : f32 to vector<1x128xf32>
    %38 = arith.maximumf %36, %37 : vector<1x128xf32>
    %c6 = arith.constant 6 : index
    %39 = memref.load %arg1[%c6] : memref<22xf32, #tpu.memory_space<smem>>
    %40 = vector.broadcast %39 : f32 to vector<1x128xf32>
    %41 = arith.mulf %1, %40 : vector<1x128xf32>
    %c7 = arith.constant 7 : index
    %42 = memref.load %arg1[%c7] : memref<22xf32, #tpu.memory_space<smem>>
    %43 = vector.broadcast %42 : f32 to vector<1x128xf32>
    %44 = arith.mulf %2, %43 : vector<1x128xf32>
    %45 = arith.addf %41, %44 : vector<1x128xf32>
    %c11 = arith.constant 11 : index
    %46 = memref.load %arg1[%c11] : memref<22xf32, #tpu.memory_space<smem>>
    %47 = vector.broadcast %46 : f32 to vector<1x128xf32>
    %48 = arith.addf %45, %47 : vector<1x128xf32>
    %cst_4 = arith.constant 0.000000e+00 : f32
    %49 = vector.broadcast %cst_4 : f32 to vector<1x128xf32>
    %50 = arith.maximumf %48, %49 : vector<1x128xf32>
    %c12 = arith.constant 12 : index
    %51 = memref.load %arg1[%c12] : memref<22xf32, #tpu.memory_space<smem>>
    %52 = vector.broadcast %51 : f32 to vector<1x128xf32>
    %53 = arith.mulf %14, %52 : vector<1x128xf32>
    %c13 = arith.constant 13 : index
    %54 = memref.load %arg1[%c13] : memref<22xf32, #tpu.memory_space<smem>>
    %55 = vector.broadcast %54 : f32 to vector<1x128xf32>
    %56 = arith.mulf %26, %55 : vector<1x128xf32>
    %57 = arith.addf %53, %56 : vector<1x128xf32>
    %c14 = arith.constant 14 : index
    %58 = memref.load %arg1[%c14] : memref<22xf32, #tpu.memory_space<smem>>
    %59 = vector.broadcast %58 : f32 to vector<1x128xf32>
    %60 = arith.mulf %38, %59 : vector<1x128xf32>
    %61 = arith.addf %57, %60 : vector<1x128xf32>
    %c15 = arith.constant 15 : index
    %62 = memref.load %arg1[%c15] : memref<22xf32, #tpu.memory_space<smem>>
    %63 = vector.broadcast %62 : f32 to vector<1x128xf32>
    %64 = arith.mulf %50, %63 : vector<1x128xf32>
    %65 = arith.addf %61, %64 : vector<1x128xf32>
    %c20 = arith.constant 20 : index
    %66 = memref.load %arg1[%c20] : memref<22xf32, #tpu.memory_space<smem>>
    %67 = vector.broadcast %66 : f32 to vector<1x128xf32>
    %68 = arith.addf %65, %67 : vector<1x128xf32>
    %cst_5 = arith.constant 5.000000e-01 : f32
    %69 = vector.broadcast %cst_5 : f32 to vector<1x128xf32>
    %70 = arith.mulf %69, %68 : vector<1x128xf32>
    %71 = math.tanh %70 : vector<1x128xf32>
    %cst_6 = arith.constant 1.000000e+00 : f32
    %72 = vector.broadcast %cst_6 : f32 to vector<1x128xf32>
    %73 = arith.addf %71, %72 : vector<1x128xf32>
    %cst_7 = arith.constant 5.000000e-01 : f32
    %74 = vector.broadcast %cst_7 : f32 to vector<1x128xf32>
    %75 = arith.mulf %74, %73 : vector<1x128xf32>
    %c0_8 = arith.constant 0 : index
    %c0_9 = arith.constant 0 : index
    %76 = vector.load %arg3[%c0_8, %c0_9] : memref<2x128xf32, #tpu.memory_space<vmem>>, vector<1x128xf32>
    tpu.vector_store %arg3[%c0_8, %c0_9], %75 {strides = array<i32>} : memref<2x128xf32, #tpu.memory_space<vmem>>, vector<1x128xf32>,
    %c16 = arith.constant 16 : index
    %77 = memref.load %arg1[%c16] : memref<22xf32, #tpu.memory_space<smem>>
    %78 = vector.broadcast %77 : f32 to vector<1x128xf32>
    %79 = arith.mulf %14, %78 : vector<1x128xf32>
    %c17 = arith.constant 17 : index
    %80 = memref.load %arg1[%c17] : memref<22xf32, #tpu.memory_space<smem>>
    %81 = vector.broadcast %80 : f32 to vector<1x128xf32>
    %82 = arith.mulf %26, %81 : vector<1x128xf32>
    %83 = arith.addf %79, %82 : vector<1x128xf32>
    %c18 = arith.constant 18 : index
    %84 = memref.load %arg1[%c18] : memref<22xf32, #tpu.memory_space<smem>>
    %85 = vector.broadcast %84 : f32 to vector<1x128xf32>
    %86 = arith.mulf %38, %85 : vector<1x128xf32>
    %87 = arith.addf %83, %86 : vector<1x128xf32>
    %c19 = arith.constant 19 : index
    %88 = memref.load %arg1[%c19] : memref<22xf32, #tpu.memory_space<smem>>
    %89 = vector.broadcast %88 : f32 to vector<1x128xf32>
    %90 = arith.mulf %50, %89 : vector<1x128xf32>
    %91 = arith.addf %87, %90 : vector<1x128xf32>
    %c21 = arith.constant 21 : index
    %92 = memref.load %arg1[%c21] : memref<22xf32, #tpu.memory_space<smem>>
    %93 = vector.broadcast %92 : f32 to vector<1x128xf32>
    %94 = arith.addf %91, %93 : vector<1x128xf32>
    %cst_10 = arith.constant 5.000000e-01 : f32
    %95 = vector.broadcast %cst_10 : f32 to vector<1x128xf32>
    %96 = arith.mulf %95, %94 : vector<1x128xf32>
    %97 = math.tanh %96 : vector<1x128xf32>
    %cst_11 = arith.constant 1.000000e+00 : f32
    %98 = vector.broadcast %cst_11 : f32 to vector<1x128xf32>
    %99 = arith.addf %97, %98 : vector<1x128xf32>
    %cst_12 = arith.constant 5.000000e-01 : f32
    %100 = vector.broadcast %cst_12 : f32 to vector<1x128xf32>
    %101 = arith.mulf %100, %99 : vector<1x128xf32>
    %c1_13 = arith.constant 1 : index
    %c0_14 = arith.constant 0 : index
    %102 = vector.load %arg3[%c1_13, %c0_14] : memref<2x128xf32, #tpu.memory_space<vmem>>, vector<1x128xf32>
    tpu.vector_store %arg3[%c1_13, %c0_14], %101 {strides = array<i32>} : memref<2x128xf32, #tpu.memory_space<vmem>>, vector<1x128xf32>,
    return
  }
  func.func @transform_0(%arg0: i32) -> i32 {
    %c0_i32 = arith.constant 0 : i32
    %c0_i32_0 = arith.constant 0 : i32
    return %c0_i32 : i32
  }
  func.func @transform_1(%arg0: i32) -> (i32, i32) {
    %c0_i32 = arith.constant 0 : i32
    %c0_i32_0 = arith.constant 0 : i32
    return %c0_i32, %arg0 : i32, i32
  }
  func.func @transform_2(%arg0: i32) -> (i32, i32) {
    %c0_i32 = arith.constant 0 : i32
    %c0_i32_0 = arith.constant 0 : i32
    return %c0_i32, %arg0 : i32, i32
  }
}

</mosaic_0001>

<bundles_post_ra>
// kernel: tpu_custom_call.1
= control target key start
LH: loop header
LB: loop body
LE: loop exit
PB: predicated region body
PF: predicated region fallthrough
CT: control target
= control target key end

     0   :  { %7 = vsyncpa [#allocation4], 0  ;;  %s290_s0 = inlined_call_operand.hbm [shape: f32[22], index: 0, kind: input, shape index: {}]   ;;  %s291_s1 = inlined_call_operand.vmem [shape: f32[2,128], index: 1, kind: input, shape index: {}]   ;;  %s292_s2 = inlined_call_operand.hbm [shape: f32[2,128], index: 2, kind: output, shape index: {}]  }
   0x1   :  { %8 = vsyncpa [#allocation3], 0  ;;  %s168_s11 = scalar_lea.hbm %s290_s0, 16 }
   0x2   :  { %p169_p0 = scmp.ne.s32.totalorder %s290_s0, %s168_s11  ;;  %p172_p1 = scmp.lt.u32.totalorder %s168_s11, %s290_s0 }
   0x4   :  { %p174_p2 = pnand %p172_p1, %p169_p0 }
   0x6   :  { %177 = shalt.err (!%p174_p2)
}
   0x7   :  { %s204_s16 = smov [#allocation2]  }
   0x8   :  { %16 = dma.hbm_to_smem %s290_s0, 16, %s204_s16, [#allocation4]  }
   0x9   :  { %200 = dma.done.wait [#allocation4], 16  }
   0xa   :  { %201 = vsyncadd [#allocation4], 4294967280 }
   0xb   :  { %22 = sfence }
   0xc   :  { %s24_s19 = sld [smem:[#allocation2]]  ;;  %s141_s20 = sld [smem:[#allocation2 + $0x1]]  ;;  %v23_v0 = vld [vmem:[%s291_s1] sm:$0x3] }
   0xd   :  { %s143_s21 = sld [smem:[#allocation2 + $0x2]]  ;;  %s233_s22 = sld [smem:[#allocation2 + $0x8]] }
   0xe   :  { %s144_s23 = sld [smem:[#allocation2 + $0x3]]  ;;  %s146_s24 = sld [smem:[#allocation2 + $0x4]] }
   0xf   :  { %s147_s25 = sld [smem:[#allocation2 + $0x5]]  ;;  %s238_s28 = sld [smem:[#allocation2 + $0x9]] }
  0x10   :  { %s240_s29 = sld [smem:[#allocation2 + $0x6]]  ;;  %s242_s0 = sld [smem:[#allocation2 + $0xa]] }
  0x11   :  { %s244_s30 = sld [smem:[#allocation2 + $0x7]]  ;;  %s246_s3 = sld [smem:[#allocation2 + $0xb]] }
  0x12   :  { %v25_v1 = vstv %s24_s19  ;;  %v28_v2 = vstv %s141_s20  ;;  %s248_s4 = sld [smem:[#allocation2 + $0xc]]  ;;  %s250_s1 = sld [smem:[#allocation2 + $0xd]] }
  0x13   :  { %v26_v3 = vmul.f32 %v25_v1, %v23_v0  ;;  %v29_v4 = vmul.f32 %v28_v2, %v23_v0  ;;  %v39_v5 = vstv %s143_s21  ;;  %s252_s5 = sld [smem:[#allocation2 + $0xe]]  ;;  %s254_s6 = sld [smem:[#allocation2 + $0x10]]  ;;  %v35_v12 = vstv %s233_s22 }
  0x14   :  { %v40_v6 = vmul.f32 %v39_v5, %v23_v0  ;;  %v42_v7 = vstv %s144_s23  ;;  %v53_v10 = vstv %s146_s24  ;;  %s256_s7 = sld [smem:[#allocation2 + $0x11]]  ;;  %s258_s8 = sld [smem:[#allocation2 + $0x12]] }
  0x15   :  { %v31_v8 = vrot.slane %v29_v4, 1  ;;  %v43_v9 = vmul.f32 %v42_v7, %v23_v0  ;;  %v56_v11 = vstv %s147_s25  ;;  %v54_v13 = vmul.f32 %v53_v10, %v23_v0  ;;  %s263_s9 = sld [smem:[#allocation2 + $0xf]]  ;;  %s265_s10 = sld [smem:[#allocation2 + $0x13]] }
  0x16   :  { %v57_v14 = vmul.f32 %v56_v11, %v23_v0  ;;  %v67_v15 = vstv %s240_s29  ;;  %v49_v19 = vstv %s238_s28  ;;  %v63_v25 = vstv %s242_s0  ;;  %s156_s11 = sld [smem:[#allocation2 + $0x14]]  ;;  %s161_s12 = sld [smem:[#allocation2 + $0x15]] }
  0x17   :  { %v33_v16 = vadd.f32 %v31_v8, %v26_v3  ;;  %v45_v17 = vrot.slane %v43_v9, 1  ;;  %v70_v18 = vstv %s244_s30  ;;  %v68_v21 = vmul.f32 %v67_v15, %v23_v0  ;;  %s205_s13 = smov [#allocation5]  }
  0x18   :  { %v59_v20 = vrot.slane %v57_v14, 1  ;;  %v71_v22 = vmul.f32 %v70_v18, %v23_v0  ;;  %v77_v28 = vstv %s246_s3  ;;  %v81_v29 = vstv %s248_s4  ;;  %s132_s14 = sshll.u32 %s205_s13, 4  ;;  %s133_s14 = int_to_ptr.vmem [resolvable:$true] %s132_s14 }
  0x19   :  { %v36_v23 = vadd.f32 %v35_v12, %v33_v16  ;;  %v47_v24 = vadd.f32 %v45_v17, %v40_v6  ;;  %v84_v32 = vstv %s250_s1  ;;  %v104_v33 = vstv %s254_s6  ;;  %s178_s15 = scalar_lea.vmem %s133_s14, 32  ;;  %p183_p4 = scmp.lt.s32.totalorder %s133_s14, %s133_s14 }
  0x1a   :  { %v61_v26 = vadd.f32 %v59_v20, %v54_v13  ;;  %v73_v27 = vrot.slane %v71_v22, 1  ;;  %v88_v36 = vstv %s252_s5  ;;  %v107_v37 = vstv %s256_s7  ;;  %p179_p3 = scmp.ne.s32.totalorder %s133_s14, %s178_s15  ;;  %p184_p5 = scmp.lt.s32.totalorder %s178_s15, %s178_s15 }
  0x1b   :  { %v37_v30 = vmax.f32 %v36_v23, 0.0  ;;  %v50_v31 = vadd.f32 %v49_v19, %v47_v24  ;;  %v111_v41 = vstv %s258_s8  ;;  %v92_v45 = vstv %s263_s9 }
  0x1c   :  { %v64_v34 = vadd.f32 %v63_v25, %v61_v26  ;;  %v75_v35 = vadd.f32 %v73_v27, %v68_v21  ;;  %v115_v47 = vstv %s265_s10  ;;  %v96_v57 = vstv %s156_s11  ;;  %p185_p6 = por %p184_p5, %p183_p4 }
  0x1d   :  { %v51_v38 = vmax.f32 %v50_v31, 0.0  ;;  %v82_v39 = vmul.f32 %v81_v29, %v37_v30  ;;  %v105_v40 = vmul.f32 %v104_v33, %v37_v30  ;;  %v119_v58 = vstv %s161_s12 }
  0x1e   :  { %v65_v42 = vmax.f32 %v64_v34, 0.0  ;;  %v78_v43 = vadd.f32 %v77_v28, %v75_v35  ;;  %p186_p7 = pnand %p185_p6, %p179_p3 }
  0x1f   :  { %v85_v44 = vmul.f32 %v84_v32, %v51_v38  ;;  %v108_v46 = vmul.f32 %v107_v37, %v51_v38 }
  0x20   :  { %v79_v48 = vmax.f32 %v78_v43, 0.0  ;;  %v89_v49 = vmul.f32 %v88_v36, %v65_v42  ;;  %v112_v50 = vmul.f32 %v111_v41, %v65_v42 }
  0x21   :  { %v86_v51 = vadd.f32 %v85_v44, %v82_v39  ;;  %v109_v52 = vadd.f32 %v108_v46, %v105_v40 }
  0x22   :  { %v93_v53 = vmul.f32 %v92_v45, %v79_v48  ;;  %v116_v54 = vmul.f32 %v115_v47, %v79_v48 }
  0x23   :  { %v90_v55 = vadd.f32 %v89_v49, %v86_v51  ;;  %v113_v56 = vadd.f32 %v112_v50, %v109_v52 }
  0x25   :  { %v94_v59 = vadd.f32 %v93_v53, %v90_v55  ;;  %v117_v60 = vadd.f32 %v116_v54, %v113_v56 }
  0x27   :  { %v97_v61 = vadd.f32 %v96_v57, %v94_v59  ;;  %v120_v62 = vadd.f32 %v119_v58, %v117_v60 }
  0x29   :  { %v98_v63 = vmul.f32 0.5, %v97_v61  ;;  %v121_v0 = vmul.f32 0.5, %v120_v62 }
  0x2b   :  { %164 = vtanh.f32 %v98_v63 }
  0x2c   :  { %166 = vtanh.f32 %v121_v0 }
  0x35   :  { %v165_v1 = vpop.eup %164 }
  0x36   :  { %v167_v2 = vpop.eup %166  ;;  %v100_v3 = vadd.f32 1.0, %v165_v1 }
  0x37   :  { %v123_v4 = vadd.f32 1.0, %v167_v2 }
  0x38   :  { %v101_v5 = vmul.f32 0.5, %v100_v3 }
  0x39   :  { %v124_v6 = vmul.f32 0.5, %v123_v4 }
  0x3a   :  { %102 = vst [vmem:[#allocation5] sm:$0x1] %v101_v5 }
  0x3b   :  { %125 = vst [vmem:[#allocation5 + $0x1] sm:$0x1] %v124_v6 }
  0x3c   :  { %189 = shalt.err (!%p186_p7)
}
  0x3d   :  { %s190_s18 = scalar_lea.hbm %s292_s2, 32 }
  0x3e   :  { %p191_p8 = scmp.ne.s32.totalorder %s292_s2, %s190_s18  ;;  %p194_p9 = scmp.lt.u32.totalorder %s190_s18, %s292_s2 }
  0x40   :  { %p196_p10 = pnand %p194_p9, %p191_p8 }
  0x42   :  { %199 = shalt.err (!%p196_p10)
}
  0x43   :  { %135 = dma.vmem_to_hbm [thread:$0]  %s133_s14, 32, %s292_s2, [#allocation3]  }
  0x44   :  { %202 = dma.done.wait [#allocation3], 32  }
  0x45   :  { %203 = vsyncadd [#allocation3], 4294967264 }
  0x46   :  { %139 = vsyncpa [#allocation3], 1 }
  0x47   :  { %140 = vsyncpa [#allocation4], 1 }

</bundles_post_ra>
